<compile_context>
chip_gen: v6e
topology: v6e:2x2x1
jax: 0.10.0
libtpu: 0.0.40
codegen_flags: <defaults>
</compile_context>

<pallas_src>
import jax
import jax.numpy as jnp
from jax.experimental import pallas as pl
from jax.experimental.pallas import tpu as pltpu


def _qnet_kernel(xT_ref, w1T_ref, b1_ref, w2T_ref, b2_ref, w3_ref, b3_ref,
                 o_ref):
    # Layout (batch on lanes):
    #   xT_ref  : (n_obs+n_act, TM)   features on sublanes, batch on lanes
    #   w1T_ref : (64, n_obs+n_act)
    #   w2T_ref : (64, 64)
    #   b1/b2/w3: (64, 1) columns (broadcast along lanes)
    #   b3_ref  : (1,) scalar in SMEM
    #   o_ref   : (1, TM) lane-dense output row
    xT = xT_ref[...]

    # layer 1: single K=12 matmul fuses the obs/act concat; ReLU epilogue.
    h1 = jnp.dot(w1T_ref[...], xT, preferred_element_type=jnp.float32)
    h1 = jnp.maximum(h1 + b1_ref[...], 0.0)                       # (64, TM)

    # layer 2 + residual: q = h1 + relu(W2^T h1 + b2)
    h2 = jnp.dot(w2T_ref[...], h1, preferred_element_type=jnp.float32)
    h2 = jnp.maximum(h2 + b2_ref[...], 0.0)
    q = h1 + h2                                                    # (64, TM)

    # layer 3: VPU multiply + XLU sublane reduction (no 1-row MXU matmul),
    # result is already lane-dense.
    o_ref[...] = jnp.sum(q * w3_ref[...], axis=0, keepdims=True) + b3_ref[0]


def qnet_forward(obs, act, params):
    """obs: (B, n_obs), act: (B, n_act) -> (B, 1)"""
    w1, b1, w2, b2, w3, b3 = params
    obs = obs.astype(jnp.float32)
    act = act.astype(jnp.float32)
    B, n_obs = obs.shape
    n_act = act.shape[1]
    n_in = n_obs + n_act
    hidden = w1.shape[1]

    # Host-side layout prep (all tiny tensors): batch-on-lanes transposes.
    xT = jnp.concatenate([obs.T, act.T], axis=0)       # (n_in, B) == cat([obs,act],1).T
    w1T = w1.T                                          # (hidden, n_in)
    w2T = w2.T                                          # (hidden, hidden)
    b1c = b1.reshape(hidden, 1)
    b2c = b2.reshape(hidden, 1)
    w3c = w3.reshape(hidden, 1)
    b3s = b3.reshape(1)

    # Batch (lane) tile: full batch for small B; otherwise big 128-multiple
    # tiles with at least 2 grid steps (v7x dual-TC sharding via "parallel").
    if B <= 256:
        TM = B
    else:
        TM = min(4096, 128 * pl.cdiv(pl.cdiv(B, 2), 128))
    grid = (pl.cdiv(B, TM),)

    def const_spec(shape):
        # Same block every grid step -> stays VMEM-resident, no re-DMA.
        return pl.BlockSpec(shape, lambda i: (0, 0))

    out_row = pl.pallas_call(
        _qnet_kernel,
        out_shape=jax.ShapeDtypeStruct((1, B), jnp.float32),
        grid=grid,
        in_specs=[
            pl.BlockSpec((n_in, TM), lambda i: (0, i)),          # xT
            const_spec((hidden, n_in)),                          # w1T
            const_spec((hidden, 1)),                             # b1
            const_spec((hidden, hidden)),                        # w2T
            const_spec((hidden, 1)),                             # b2
            const_spec((hidden, 1)),                             # w3 column
            pl.BlockSpec(memory_space=pltpu.MemorySpace.SMEM),   # b3 scalar
        ],
        out_specs=pl.BlockSpec((1, TM), lambda i: (0, i)),
        compiler_params=pltpu.CompilerParams(
            dimension_semantics=("parallel",)),
    )(xT, w1T, b1c, w2T, b2c, w3c, b3s)

    return out_row.reshape(B, 1)


def init_qnet_params(key, n_obs, n_act, hidden=64):
    """Deterministic synthetic init. Weights stored as (in, out); biases as (1, out)."""
    k1, k2, k3, k4, k5, k6 = jax.random.split(key, 6)

    def lin(kw, kb, fan_in, fan_out):
        bound = 1.0 / jnp.sqrt(fan_in)
        w = jax.random.uniform(kw, (fan_in, fan_out), jnp.float32, -bound, bound)
        b = jax.random.uniform(kb, (1, fan_out), jnp.float32, -bound, bound)
        return w, b

    w1, b1 = lin(k1, k2, n_obs + n_act, hidden)
    w2, b2 = lin(k3, k4, hidden, hidden)
    w3, b3 = lin(k5, k6, hidden, 1)
    return (w1, b1, w2, b2, w3, b3)


def _reference_forward(obs, act, params):
    """Pure-JAX reference of the PyTorch forward, for a sanity check."""
    w1, b1, w2, b2, w3, b3 = params
    x = jnp.concatenate([obs, act], axis=1)
    h1 = jnp.maximum(x @ w1 + b1, 0.0)
    h2 = jnp.maximum(h1 @ w2 + b2, 0.0)
    q = h1 + h2
    return q @ w3 + b3


if __name__ == "__main__":
    n_obs, n_act = 8, 4

    key = jax.random.PRNGKey(0)
    k_obs, k_act, k_param = jax.random.split(key, 3)
    params = init_qnet_params(k_param, n_obs, n_act)

    # Small spec-consistent shape, plus a shape that exercises the multi-tile
    # and partial-trailing-block paths (B=300 -> TM=256, grid=2, partial tile).
    for B in (2, 300):
        ko = jax.random.fold_in(k_obs, B)
        ka = jax.random.fold_in(k_act, B)
        obs = jax.random.normal(ko, (B, n_obs), jnp.float32)
        act = jax.random.normal(ka, (B, n_act), jnp.float32)

        out = qnet_forward(obs, act, params)
        jax.block_until_ready(out)

        ref = _reference_forward(obs, act, params)
        assert out.shape == (B, 1), out.shape
        assert jnp.allclose(out, ref, atol=1e-5, rtol=1e-5), (B, out, ref)

    print("KERNEL_OK")
</pallas_src>

<mosaic_0001>
module attributes {stable_mosaic.version = 11 : i64} {
  func.func @_qnet_kernel(%arg0: i32, %arg1: memref<12x2xf32, #tpu.memory_space<vmem>>, %arg2: memref<64x12xf32, #tpu.memory_space<vmem>>, %arg3: memref<64x1xf32, #tpu.memory_space<vmem>>, %arg4: memref<64x64xf32, #tpu.memory_space<vmem>>, %arg5: memref<64x1xf32, #tpu.memory_space<vmem>>, %arg6: memref<64x1xf32, #tpu.memory_space<vmem>>, %arg7: memref<1xf32, #tpu.memory_space<smem>>, %arg8: memref<1x2xf32, #tpu.memory_space<vmem>>) attributes {dimension_semantics = [#tpu.dimension_semantics<parallel>], iteration_bounds = array<i64: 1>, scalar_prefetch = 0 : i64, scratch_operands = 0 : i64, tpu.core_type = #tpu.core_type<tc>, window_params = [{transform_indices = @transform_0, window_bounds = array<i64: 12, 2>}, {pipeline_mode = #tpu.pipeline_mode<synchronous>, transform_indices = @transform_1, window_bounds = array<i64: 64, 12>}, {pipeline_mode = #tpu.pipeline_mode<synchronous>, transform_indices = @transform_2, window_bounds = array<i64: 64, 1>}, {pipeline_mode = #tpu.pipeline_mode<synchronous>, transform_indices = @transform_3, window_bounds = array<i64: 64, 64>}, {pipeline_mode = #tpu.pipeline_mode<synchronous>, transform_indices = @transform_4, window_bounds = array<i64: 64, 1>}, {pipeline_mode = #tpu.pipeline_mode<synchronous>, transform_indices = @transform_5, window_bounds = array<i64: 64, 1>}, {transform_indices = @transform_6, window_bounds = array<i64: 1>}, {transform_indices = @transform_7, window_bounds = array<i64: 1, 2>}]} {
    %c0 = arith.constant 0 : index
    %c0_0 = arith.constant 0 : index
    %0 = vector.load %arg1[%c0, %c0_0] : memref<12x2xf32, #tpu.memory_space<vmem>>, vector<12x2xf32>
    %c0_1 = arith.constant 0 : index
    %c0_2 = arith.constant 0 : index
    %1 = vector.load %arg2[%c0_1, %c0_2] : memref<64x12xf32, #tpu.memory_space<vmem>>, vector<64x12xf32>
    %cst = arith.constant dense<0.000000e+00> : vector<64x2xf32>
    %2 = tpu.matmul %1, %0, %cst {dimension_numbers = #tpu.dot_dimension_numbers<[1], [0], [0], [1], [0, 0, 1, 1], [], []>} : vector<64x12xf32>, vector<12x2xf32>, vector<64x2xf32> -> vector<64x2xf32>
    %c0_3 = arith.constant 0 : index
    %c0_4 = arith.constant 0 : index
    %3 = vector.load %arg3[%c0_3, %c0_4] : memref<64x1xf32, #tpu.memory_space<vmem>>, vector<64x1xf32>
    %4 = vector.broadcast %3 : vector<64x1xf32> to vector<64x2xf32>
    %5 = arith.addf %2, %4 : vector<64x2xf32>
    %cst_5 = arith.constant 0.000000e+00 : f32
    %6 = vector.broadcast %cst_5 : f32 to vector<64x2xf32>
    %7 = arith.maximumf %5, %6 : vector<64x2xf32>
    %c0_6 = arith.constant 0 : index
    %c0_7 = arith.constant 0 : index
    %8 = vector.load %arg4[%c0_6, %c0_7] : memref<64x64xf32, #tpu.memory_space<vmem>>, vector<64x64xf32>
    %cst_8 = arith.constant dense<0.000000e+00> : vector<64x2xf32>
    %9 = tpu.matmul %8, %7, %cst_8 {dimension_numbers = #tpu.dot_dimension_numbers<[1], [0], [0], [1], [0, 0, 1, 1], [], []>} : vector<64x64xf32>, vector<64x2xf32>, vector<64x2xf32> -> vector<64x2xf32>
    %c0_9 = arith.constant 0 : index
    %c0_10 = arith.constant 0 : index
    %10 = vector.load %arg5[%c0_9, %c0_10] : memref<64x1xf32, #tpu.memory_space<vmem>>, vector<64x1xf32>
    %11 = vector.broadcast %10 : vector<64x1xf32> to vector<64x2xf32>
    %12 = arith.addf %9, %11 : vector<64x2xf32>
    %cst_11 = arith.constant 0.000000e+00 : f32
    %13 = vector.broadcast %cst_11 : f32 to vector<64x2xf32>
    %14 = arith.maximumf %12, %13 : vector<64x2xf32>
    %15 = arith.addf %7, %14 : vector<64x2xf32>
    %c0_12 = arith.constant 0 : index
    %c0_13 = arith.constant 0 : index
    %16 = vector.load %arg6[%c0_12, %c0_13] : memref<64x1xf32, #tpu.memory_space<vmem>>, vector<64x1xf32>
    %17 = vector.broadcast %16 : vector<64x1xf32> to vector<64x2xf32>
    %18 = arith.mulf %15, %17 : vector<64x2xf32>
    %cst_14 = arith.constant dense<0.000000e+00> : vector<2xf32>
    %19 = vector.multi_reduction <add>, %18, %cst_14 [0] : vector<64x2xf32> to vector<2xf32>
    %20 = vector.shape_cast %19 : vector<2xf32> to vector<1x2xf32>
    %c0_15 = arith.constant 0 : index
    %21 = memref.load %arg7[%c0_15] : memref<1xf32, #tpu.memory_space<smem>>
    %22 = vector.broadcast %21 : f32 to vector<1x2xf32>
    %23 = arith.addf %20, %22 : vector<1x2xf32>
    %c0_16 = arith.constant 0 : index
    %c0_17 = arith.constant 0 : index
    %24 = vector.load %arg8[%c0_16, %c0_17] : memref<1x2xf32, #tpu.memory_space<vmem>>, vector<1x2xf32>
    tpu.vector_store %arg8[%c0_16, %c0_17], %23 {strides = array<i32>} : memref<1x2xf32, #tpu.memory_space<vmem>>, vector<1x2xf32>,
    return
  }
  func.func @transform_0(%arg0: i32) -> (i32, i32) {
    %c0_i32 = arith.constant 0 : i32
    %c0_i32_0 = arith.constant 0 : i32
    return %c0_i32, %arg0 : i32, i32
  }
  func.func @transform_1(%arg0: i32) -> (i32, i32) {
    %c0_i32 = arith.constant 0 : i32
    %c0_i32_0 = arith.constant 0 : i32
    %c0_i32_1 = arith.constant 0 : i32
    return %c0_i32, %c0_i32_0 : i32, i32
  }
  func.func @transform_2(%arg0: i32) -> (i32, i32) {
    %c0_i32 = arith.constant 0 : i32
    %c0_i32_0 = arith.constant 0 : i32
    %c0_i32_1 = arith.constant 0 : i32
    return %c0_i32, %c0_i32_0 : i32, i32
  }
  func.func @transform_3(%arg0: i32) -> (i32, i32) {
    %c0_i32 = arith.constant 0 : i32
    %c0_i32_0 = arith.constant 0 : i32
    %c0_i32_1 = arith.constant 0 : i32
    return %c0_i32, %c0_i32_0 : i32, i32
  }
  func.func @transform_4(%arg0: i32) -> (i32, i32) {
    %c0_i32 = arith.constant 0 : i32
    %c0_i32_0 = arith.constant 0 : i32
    %c0_i32_1 = arith.constant 0 : i32
    return %c0_i32, %c0_i32_0 : i32, i32
  }
  func.func @transform_5(%arg0: i32) -> (i32, i32) {
    %c0_i32 = arith.constant 0 : i32
    %c0_i32_0 = arith.constant 0 : i32
    %c0_i32_1 = arith.constant 0 : i32
    return %c0_i32, %c0_i32_0 : i32, i32
  }
  func.func @transform_6(%arg0: i32) -> i32 {
    %c0_i32 = arith.constant 0 : i32
    %c0_i32_0 = arith.constant 0 : i32
    return %c0_i32 : i32
  }
  func.func @transform_7(%arg0: i32) -> (i32, i32) {
    %c0_i32 = arith.constant 0 : i32
    %c0_i32_0 = arith.constant 0 : i32
    return %c0_i32, %arg0 : i32, i32
  }
}

</mosaic_0001>

<bundles_post_ra>
// kernel: tpu_custom_call.1
= control target key start
LH: loop header
LB: loop body
LE: loop exit
PB: predicated region body
PF: predicated region fallthrough
CT: control target
= control target key end

     0   :  { %vm111_vm0 = vcmask 1043456   ;;  %vm86_vm1 = vcmask 97280   ;;  %v656_v4 = vmov 0   ;;  %s889_s0 = inlined_call_operand.vmem [shape: f32[12,2], index: 0, kind: input, shape index: {}]   ;;  %s890_s1 = inlined_call_operand.vmem [shape: f32[64,12], index: 1, kind: input, shape index: {}]   ;;  %s891_s2 = inlined_call_operand.vmem [shape: f32[64,1], index: 2, kind: input, shape index: {}]   ;;  %s892_s3 = inlined_call_operand.vmem [shape: f32[64,64], index: 3, kind: input, shape index: {}]   ;;  %s893_s4 = inlined_call_operand.vmem [shape: f32[64,1], index: 4, kind: input, shape index: {}]   ;;  %s894_s5 = inlined_call_operand.vmem [shape: f32[64,1], index: 5, kind: input, shape index: {}]   ;;  %s895_s6 = inlined_call_operand.<no memory space> [shape: f32[1], index: 6, kind: input, shape index: {}]   ;;  %s896_s7 = inlined_call_operand.hbm [shape: f32[1,2], index: 7, kind: output, shape index: {}]  }
   0x1   :  { %v29_v0 = vld [vmem:[%s889_s0 + $0x8] sm:$0xf]  ;;  %v28_v1 = vld [vmem:[%s889_s0] sm:$0xff]  ;;  %632 = vset.pattern.permute.xlu0 %v656_v4  ;;  %v32_v5 = vld [vmem:[%s890_s1 + $0x10] sm:$0xff]  ;;  %633 = vset.pattern.permute.xlu1 %v656_v4 }
   0x2   :  { %v30_v2 = vld [vmem:[%s890_s1] sm:$0xff]  ;;  %570 = vmatprep.subr.msk.mxu0 %vm111_vm0, %v29_v0  ;;  %v31_v3 = vld [vmem:[%s890_s1 + $0x8] sm:$0xff]  ;;  %v45_v6 = vld [vmem:[%s891_s2 + $0x38] sm:$0xff] }
   0x3   :  { %574 = vmatprep.mubr.msk.f32.mxu0 %vm86_vm1, %v30_v2  ;;  %571 = vmatpush3.msk.msra.mxu0 %vm111_vm0, %v29_v0  ;;  %v43_v7 = vld [vmem:[%s891_s2 + $0x28] sm:$0xff]  ;;  %v44_v8 = vld [vmem:[%s891_s2 + $0x30] sm:$0xff]  ;;  %v33_v9 = vld [vmem:[%s890_s1 + $0x18] sm:$0xff] }
   0x4   :  { %572 = vmatprep.subr.mxu0 %v28_v1  ;;  %83 = vperm.xlu0 %632, %v45_v6   ;;  %v42_v10 = vld [vmem:[%s891_s2 + $0x20] sm:$0xff]  ;;  %v41_v12 = vld [vmem:[%s891_s2 + $0x18] sm:$0xff]  ;;  %v35_v13 = vld [vmem:[%s890_s1 + $0x28] sm:$0xff] }
   0x5   :  { %573 = vmatpush3.msra.mxu0 %v28_v1  ;;  %73 = vperm.xlu1 %633, %v43_v7   ;;  %v34_v11 = vld [vmem:[%s890_s1 + $0x20] sm:$0xff]  ;;  %v40_v14 = vld [vmem:[%s891_s2 + $0x10] sm:$0xff] }
   0x6   :  { %575 = vmatmul.mubr.msk.f32.vlgmr.msra.gmra.mxu0 %vm86_vm1, %v31_v3  ;;  %v36_v15 = vld [vmem:[%s890_s1 + $0x30] sm:$0xff] }
   0x7   :  { %577 = vmatprep.mubr.msk.f32.mxu0 %vm86_vm1, %v32_v5 }
   0x8   :  { %78 = vperm.xlu0 %632, %v44_v8  }
   0x9   :  { %68 = vperm.xlu1 %633, %v42_v10  }
   0xa   :  { %578 = vmatmul.mubr.msk.f32.gmra.mxu0 %vm86_vm1, %v33_v9 }
   0xb   :  { %580 = vmatprep.mubr.msk.f32.mxu0 %vm86_vm1, %v34_v11 }
   0xc   :  { %13 = vsyncpa [#allocation4], 0  ;;  %63 = vperm.xlu0 %632, %v41_v12   ;;  %v39_v16 = vld [vmem:[%s891_s2 + $0x8] sm:$0xff]  ;;  %v37_v17 = vld [vmem:[%s890_s1 + $0x38] sm:$0xff]  ;;  %vm284_vm2 = vcmask 523264   ;;  %vm486_vm3 = vcmask 15360  }
   0xd   :  { %58 = vperm.xlu1 %633, %v40_v14   ;;  %v38_v18 = vld [vmem:[%s891_s2] sm:$0xff]  ;;  %v237_v20 = vld [vmem:[%s893_s4 + $0x8] sm:$0xff]  ;;  %v238_v21 = vld [vmem:[%s893_s4 + $0x10] sm:$0xff]  ;;  %s657_s8 = smov [#allocation3]   ;;  %vm511_vm4 = vcmask 8192  }
   0xe   :  { %581 = vmatmul.mubr.msk.f32.gmra.mxu0 %vm86_vm1, %v35_v13  ;;  %v236_v19 = vld [vmem:[%s893_s4] sm:$0xff]  ;;  %v239_v22 = vld [vmem:[%s893_s4 + $0x18] sm:$0xff]  ;;  %v431_v25 = vld [vmem:[%s894_s5 + $0x8] sm:$0xff]  ;;  %s519_s9 = sshll.u32 %s657_s8, 4  ;;  %s520_s9 = int_to_ptr.vmem [resolvable:$true] %s519_s9 }
   0xf   :  { %583 = vmatprep.mubr.msk.f32.mxu0 %vm86_vm1, %v36_v15  ;;  %v240_v23 = vld [vmem:[%s893_s4 + $0x20] sm:$0xff]  ;;  %v241_v26 = vld [vmem:[%s893_s4 + $0x28] sm:$0xff]  ;;  %v432_v27 = vld [vmem:[%s894_s5 + $0x10] sm:$0xff]  ;;  %s634_s10 = scalar_lea.vmem %s520_s9, 16  ;;  %s638_s0 = scalar_lea.vmem %s520_s9, 32 }
  0x10   :  { %53 = vperm.xlu0 %632, %v39_v16   ;;  %v430_v24 = vld [vmem:[%s894_s5] sm:$0xff]  ;;  %v242_v28 = vld [vmem:[%s893_s4 + $0x30] sm:$0xff]  ;;  %v433_v29 = vld [vmem:[%s894_s5 + $0x18] sm:$0xff]  ;;  %p635_p0 = scmp.ne.s32.totalorder %s520_s9, %s634_s10  ;;  %p639_p1 = scmp.lt.s32.totalorder %s520_s9, %s520_s9 }
  0x11   :  { %48 = vperm.xlu1 %633, %v38_v18   ;;  %v243_v30 = vld [vmem:[%s893_s4 + $0x38] sm:$0xff]  ;;  %v434_v31 = vld [vmem:[%s894_s5 + $0x20] sm:$0xff]  ;;  %v435_v32 = vld [vmem:[%s894_s5 + $0x28] sm:$0xff]  ;;  %p640_p2 = scmp.lt.s32.totalorder %s638_s0, %s634_s10 }
  0x12   :  { %584 = vmatmul.mubr.msk.f32.gmra.mxu0 %vm86_vm1, %v37_v17  ;;  %v436_v33 = vld [vmem:[%s894_s5 + $0x30] sm:$0xff]  ;;  %v437_v34 = vld [vmem:[%s894_s5 + $0x38] sm:$0xff]  ;;  %v228_v35 = vld [vmem:[%s892_s3] sm:$0xff] }
  0x13   :  { %v230_v36 = vld [vmem:[%s892_s3 + $0x10] sm:$0xff]  ;;  %602 = vmatprep.mubr.msk.f32.mxu0 %vm284_vm2, %v228_v35  ;;  %v229_v5 = vld [vmem:[%s892_s3 + $0x8] sm:$0xff]  ;;  %v231_v6 = vld [vmem:[%s892_s3 + $0x18] sm:$0xff]  ;;  %p641_p3 = por %p640_p2, %p639_p1 }
  0x14   :  { %246 = vperm.xlu0 %632, %v236_v19   ;;  %605 = vmatprep.mubr.msk.f32.mxu1 %vm284_vm2, %v230_v36  ;;  %v232_v7 = vld [vmem:[%s892_s3 + $0x20] sm:$0xff]  ;;  %v233_v8 = vld [vmem:[%s892_s3 + $0x28] sm:$0xff]  ;;  %v234_v9 = vld [vmem:[%s892_s3 + $0x30] sm:$0xff] }
  0x15   :  { %251 = vperm.xlu1 %633, %v237_v20   ;;  %v235_v10 = vld [vmem:[%s892_s3 + $0x38] sm:$0xff]  ;;  %p642_p4 = pnand %p641_p3, %p635_p0 }
  0x18   :  { %256 = vperm.xlu0 %632, %v238_v21  }
  0x19   :  { %261 = vperm.xlu1 %633, %v239_v22  }
  0x1c   :  { %266 = vperm.xlu0 %632, %v240_v23  }
  0x1d   :  { %440 = vperm.xlu1 %633, %v430_v24  }
  0x20   :  { %445 = vperm.xlu0 %632, %v431_v25  }
  0x21   :  { %271 = vperm.xlu1 %633, %v241_v26  }
  0x24   :  { %450 = vperm.xlu0 %632, %v432_v27  }
  0x25   :  { %276 = vperm.xlu1 %633, %v242_v28  }
  0x28   :  { %455 = vperm.xlu0 %632, %v433_v29  }
  0x29   :  { %281 = vperm.xlu1 %633, %v243_v30  }
  0x2c   :  { %460 = vperm.xlu0 %632, %v434_v31  }
  0x2d   :  { %465 = vperm.xlu1 %633, %v435_v32  }
  0x30   :  { %470 = vperm.xlu0 %632, %v436_v33  }
  0x31   :  { %475 = vperm.xlu1 %633, %v437_v34  }
  0x7f   :  { %v84_v39 = vpop.permute.xlu0 %83 }
  0x80   :  { %v74_v41 = vpop.permute.xlu1 %73 }
  0x83   :  { %v79_v44 = vpop.permute.xlu0 %78 }
  0x84   :  { %v69_v46 = vpop.permute.xlu1 %68 }
  0x87   :  { %v64_v53 = vpop.permute.xlu0 %63 }
  0x88   :  { %v59_v56 = vpop.permute.xlu1 %58 }
  0x8b   :  { %v54_v61 = vpop.permute.xlu0 %53 }
  0x8c   :  { %v49_v0 = vpop.permute.xlu1 %48 }
  0x8f   :  { %v247_v11 = vpop.permute.xlu0 %246 }
  0x90   :  { %v252_v12 = vpop.permute.xlu1 %251 }
  0x93   :  { %v257_v13 = vpop.permute.xlu0 %256 }
  0x94   :  { %v262_v14 = vpop.permute.xlu1 %261 }
  0x97   :  { %v267_v15 = vpop.permute.xlu0 %266 }
  0x98   :  { %v441_v16 = vpop.permute.xlu1 %440 }
  0x9b   :  { %v446_v17 = vpop.permute.xlu0 %445 }
  0x9c   :  { %v272_v18 = vpop.permute.xlu1 %271 }
  0x9f   :  { %v451_v19 = vpop.permute.xlu0 %450 }
  0xa0   :  { %v277_v20 = vpop.permute.xlu1 %276 }
  0xa3   :  { %v456_v31 = vpop.permute.xlu0 %455 }
  0xa4   :  { %v282_v36 = vpop.permute.xlu1 %281 }
  0xc6   :  { %v576_v37 = vpop.f32.mrf.mxu0 }
  0xc7   :  { %v187_v62 = vadd.f32 %v576_v37, %v54_v61  ;;  %v466_v61 = vpop.permute.xlu1 %465 }
  0xc8   :  { %v181_v38 = vpop.f32.mrf.mxu0 }
  0xc9   :  { %v182_v1 = vadd.f32 %v181_v38, %v49_v0  ;;  %v221_v3 = vmax.f32 %v187_v62, 0.0 }
  0xca   :  { %v579_v40 = vpop.f32.mrf.mxu0 }
  0xcb   :  { %v197_v57 = vadd.f32 %v579_v40, %v64_v53  ;;  %v220_v4 = vmax.f32 %v182_v1, 0.0 }
  0xcc   :  { %v191_v42 = vpop.f32.mrf.mxu0 }
  0xcd   :  { %v192_v59 = vadd.f32 %v191_v42, %v59_v56  ;;  %v836_v63 = vmax.f32 %v197_v57, 0.0 }
  0xce   :  { %v582_v43 = vpop.f32.mrf.mxu0 }
  0xcf   :  { %v207_v50 = vadd.f32 %v582_v43, %v74_v41  ;;  %v222_v2 = vmax.f32 %v192_v59, 0.0 }
  0xd0   :  { %v201_v45 = vpop.f32.mrf.mxu0 }
  0xd1   :  { %v202_v54 = vadd.f32 %v201_v45, %v69_v46  ;;  %v824_v58 = vmax.f32 %v207_v50, 0.0 }
  0xd2   :  { %v585_v47 = vpop.f32.mrf.mxu0 }
  0xd3   :  { %v217_v48 = vadd.f32 %v585_v47, %v84_v39  ;;  %v830_v60 = vmax.f32 %v202_v54, 0.0 }
  0xd4   :  { %v211_v49 = vpop.f32.mrf.mxu0 }
  0xd5   :  { %v816_v51 = vmax.f32 %v217_v48, 0.0  ;;  %v212_v52 = vadd.f32 %v211_v49, %v79_v44  ;;  %v461_v48 = vpop.permute.xlu0 %460 }
  0xd7   :  { %v818_v55 = vmax.f32 %v212_v52, 0.0  ;;  %586 = vmatprep.subr.mxu0 %v816_v51  ;;  %614 = vmatprep.subr.mxu1 %v816_v51 }
  0xd8   :  { %587 = vmatpush3.msra.mxu0 %v816_v51  ;;  %622 = vmatpush3.msra.mxu1 %v816_v51 }
  0xd9   :  { %588 = vmatprep.subr.mxu0 %v818_v55  ;;  %615 = vmatprep.subr.mxu1 %v818_v55 }
  0xda   :  { %589 = vmatpush3.msra.mxu0 %v818_v55  ;;  %623 = vmatpush3.msra.mxu1 %v818_v55 }
  0xdb   :  { %590 = vmatprep.subr.mxu0 %v824_v58  ;;  %616 = vmatprep.subr.mxu1 %v824_v58 }
  0xdc   :  { %591 = vmatpush3.msra.mxu0 %v824_v58  ;;  %624 = vmatpush3.msra.mxu1 %v824_v58 }
  0xdd   :  { %592 = vmatprep.subr.mxu0 %v830_v60  ;;  %617 = vmatprep.subr.mxu1 %v830_v60 }
  0xde   :  { %593 = vmatpush3.msra.mxu0 %v830_v60  ;;  %625 = vmatpush3.msra.mxu1 %v830_v60 }
  0xdf   :  { %594 = vmatprep.subr.mxu0 %v836_v63  ;;  %618 = vmatprep.subr.mxu1 %v836_v63 }
  0xe0   :  { %595 = vmatpush3.msra.mxu0 %v836_v63  ;;  %626 = vmatpush3.msra.mxu1 %v836_v63 }
  0xe1   :  { %596 = vmatprep.subr.mxu0 %v222_v2  ;;  %619 = vmatprep.subr.mxu1 %v222_v2 }
  0xe2   :  { %597 = vmatpush3.msra.mxu0 %v222_v2  ;;  %627 = vmatpush3.msra.mxu1 %v222_v2 }
  0xe3   :  { %598 = vmatprep.subr.mxu0 %v221_v3  ;;  %620 = vmatprep.subr.mxu1 %v221_v3 }
  0xe4   :  { %599 = vmatpush3.msra.mxu0 %v221_v3  ;;  %628 = vmatpush3.msra.mxu1 %v221_v3 }
  0xe5   :  { %600 = vmatprep.subr.mxu0 %v220_v4  ;;  %621 = vmatprep.subr.mxu1 %v220_v4 }
  0xe6   :  { %601 = vmatpush3.msra.mxu0 %v220_v4  ;;  %629 = vmatpush3.msra.mxu1 %v220_v4 }
  0xe7   :  { %603 = vmatmul.mubr.msk.f32.vlgmr.msra.gmra.mxu0 %vm284_vm2, %v229_v5  ;;  %606 = vmatmul.mubr.msk.f32.vlgmr.msra.gmra.mxu1 %vm284_vm2, %v231_v6 }
  0xe8   :  { %608 = vmatprep.mubr.msk.f32.mxu1 %vm284_vm2, %v232_v7 }
  0xeb   :  { %609 = vmatmul.mubr.msk.f32.gmra.mxu1 %vm284_vm2, %v233_v8 }
  0xec   :  { %611 = vmatprep.mubr.msk.f32.mxu1 %vm284_vm2, %v234_v9  ;;  %v471_v9 = vpop.permute.xlu0 %470 }
  0xef   :  { %612 = vmatmul.mubr.msk.f32.gmra.mxu1 %vm284_vm2, %v235_v10 }
 0x1a7   :  { %v604_v21 = vpop.f32.mrf.mxu0  ;;  %v607_v22 = vpop.f32.mrf.mxu1 }
 0x1a8   :  { %v381_v23 = vadd.f32 %v604_v21, %v252_v12  ;;  %v391_v24 = vadd.f32 %v607_v22, %v262_v14  ;;  %v476_v12 = vpop.permute.xlu1 %475 }
 0x1a9   :  { %v375_v25 = vpop.f32.mrf.mxu0  ;;  %v385_v26 = vpop.f32.mrf.mxu1 }
 0x1aa   :  { %v415_v27 = vmax.f32 %v381_v23, 0.0  ;;  %v417_v28 = vmax.f32 %v391_v24, 0.0  ;;  %v376_v29 = vadd.f32 %v375_v25, %v247_v11  ;;  %v386_v30 = vadd.f32 %v385_v26, %v257_v13 }
 0x1ab   :  { %v610_v32 = vpop.f32.mrf.mxu1  ;;  %v509_v23 = vstv %s895_s6 }
 0x1ac   :  { %v423_v33 = vadd.f32 %v415_v27, %v221_v3  ;;  %v414_v34 = vmax.f32 %v376_v29, 0.0  ;;  %v416_v35 = vmax.f32 %v386_v30, 0.0  ;;  %v425_v37 = vadd.f32 %v417_v28, %v836_v63 }
 0x1ad   :  { %v401_v38 = vadd.f32 %v610_v32, %v272_v18  ;;  %v395_v39 = vpop.f32.mrf.mxu1 }
 0x1ae   :  { %v479_v40 = vmul.f32 %v446_v17, %v423_v33  ;;  %v422_v41 = vadd.f32 %v414_v34, %v220_v4  ;;  %v424_v42 = vadd.f32 %v416_v35, %v222_v2  ;;  %v396_v44 = vadd.f32 %v395_v39, %v267_v15 }
 0x1af   :  { %v419_v43 = vmax.f32 %v401_v38, 0.0  ;;  %v613_v45 = vpop.f32.mrf.mxu1  ;;  %v481_v49 = vmul.f32 %v456_v31, %v425_v37 }
 0x1b0   :  { %v478_v46 = vmul.f32 %v441_v16, %v422_v41  ;;  %v480_v47 = vmul.f32 %v451_v19, %v424_v42  ;;  %v418_v50 = vmax.f32 %v396_v44, 0.0  ;;  %v411_v52 = vadd.f32 %v613_v45, %v282_v36 }
 0x1b1   :  { %v405_v53 = vpop.f32.mrf.mxu1  ;;  %v488_v54 = vsel %vm486_vm3, %v479_v40, 0.0  ;;  %v427_v57 = vadd.f32 %v419_v43, %v824_v58  ;;  %v492_v5 = vsel %vm486_vm3, %v481_v49, 0.0 }
 0x1b2   :  { %v487_v56 = vsel %vm486_vm3, %v478_v46, 0.0  ;;  %v406_v59 = vadd.f32 %v405_v53, %v277_v20  ;;  %v426_v63 = vadd.f32 %v418_v50, %v830_v60  ;;  %v421_v0 = vmax.f32 %v411_v52, 0.0 }
 0x1b3   :  { %v489_v62 = vadd.f32 %v488_v54, %v487_v56  ;;  %v490_v1 = vsel %vm486_vm3, %v480_v47, 0.0  ;;  %v483_v6 = vmul.f32 %v466_v61, %v427_v57 }
 0x1b4   :  { %v420_v2 = vmax.f32 %v406_v59, 0.0  ;;  %v482_v4 = vmul.f32 %v461_v48, %v426_v63  ;;  %v429_v7 = vadd.f32 %v421_v0, %v816_v51 }
 0x1b5   :  { %v491_v3 = vadd.f32 %v490_v1, %v489_v62  ;;  %v496_v13 = vsel %vm486_vm3, %v483_v6, 0.0 }
 0x1b6   :  { %v428_v8 = vadd.f32 %v420_v2, %v818_v55  ;;  %v494_v10 = vsel %vm486_vm3, %v482_v4, 0.0  ;;  %v485_v14 = vmul.f32 %v476_v12, %v429_v7 }
 0x1b7   :  { %v493_v58 = vadd.f32 %v492_v5, %v491_v3 }
 0x1b8   :  { %v484_v11 = vmul.f32 %v471_v9, %v428_v8  ;;  %v500_v18 = vsel %vm486_vm3, %v485_v14, 0.0 }
 0x1b9   :  { %v495_v60 = vadd.f32 %v494_v10, %v493_v58 }
 0x1ba   :  { %v498_v16 = vsel %vm486_vm3, %v484_v11, 0.0 }
 0x1bb   :  { %v497_v15 = vadd.f32 %v496_v13, %v495_v60 }
 0x1bd   :  { %v499_v17 = vadd.f32 %v498_v16, %v497_v15 }
 0x1bf   :  { %v501_v19 = vadd.f32 %v500_v18, %v499_v17 }
 0x1c1   :  { %v502_v51 = vrot.slane %v501_v19, 4 }
 0x1c3   :  { %v503_v20 = vadd.f32 %v502_v51, %v501_v19 }
 0x1c5   :  { %v504_v55 = vrot.slane %v503_v20, 2 }
 0x1c7   :  { %v505_v21 = vadd.f32 %v504_v55, %v503_v20 }
 0x1c9   :  { %v506_v22 = vrot.slane %v505_v21, 1 }
 0x1cb   :  { %v507_v24 = vadd.f32 %v506_v22, %v505_v21 }
 0x1cd   :  { %v510_v25 = vadd.f32 %v509_v23, %v507_v24 }
 0x1cf   :  { %512 = vst.msk [vmem:[#allocation3] sm:$0x1] %vm511_vm4, %v510_v25 }
 0x1d0   :  { %645 = shalt.err (!%p642_p4)
}
 0x1d1   :  { %522 = dma.vmem_to_hbm [thread:$0]  %s520_s9, 16, %s896_s7, [#allocation4]  }
 0x1d2   :  { %654 = dma.done.wait [#allocation4], 16  }
 0x1d3   :  { %655 = vsyncadd [#allocation4], 4294967280 }
 0x1d4   :  { %526 = vsyncpa [#allocation4], 1 }

</bundles_post_ra>
